<compile_context>
chip_gen: v5e
topology: v5e:2x2
jax: 0.10.0
libtpu: 0.0.40
codegen_flags: <defaults>
</compile_context>

<pallas_src>
import math
from functools import partial

import jax
import jax.numpy as jnp
from jax import lax
from jax.experimental import pallas as pl
from jax.experimental.pallas import tpu as pltpu


def _twin_attention_kernel(q_ref, kv_ref, w_ref, b_ref, o_ref, *, scale, n_iters):
    """One (branch, batch) element of the fused 4-step attention chain.

    q_ref  : (1, 1, L, E)  fixed query sequence for this branch / batch elem
    kv_ref : (1, 1, L, E)  initial key/value sequence (the other modality)
    w_ref  : (1, 4, E, E)  pre-transposed [Wq^T, Wk^T, Wv^T, Wo^T]
    b_ref  : (1, 4, 1, E)  [bq, bk, bv, bo]
    o_ref  : (1, 1, 1, E)  token-0 feature of the final attention output
    """
    q = q_ref[0, 0]                      # (L, E)
    kv0 = kv_ref[0, 0]                   # (L, E)
    L, E = q.shape

    wq = w_ref[0, 0]
    wk = w_ref[0, 1]
    wv = w_ref[0, 2]
    wo = w_ref[0, 3]
    bq = b_ref[0, 0]                     # (1, E)
    bk = b_ref[0, 1]
    bv = b_ref[0, 2]
    bo = b_ref[0, 3]

    # Hoisted: the query projection depends only on the branch's fixed query.
    qp = jnp.dot(q, wq, preferred_element_type=jnp.float32) + bq        # (L, E)
    # Hoisted bias broadcasts for the K/V projections (used in every step).
    bk_b = jnp.broadcast_to(bk, (L, E))
    bv_b = jnp.broadcast_to(bv, (L, E))

    def kv_proj(kv_cur):
        kp = jnp.dot(kv_cur, wk, preferred_element_type=jnp.float32) + bk_b
        vp = jnp.dot(kv_cur, wv, preferred_element_type=jnp.float32) + bv_b
        return kp, vp

    def attn_core(q_proj, kp, vp):
        # q_proj @ kp^T, contracted over E without an explicit transpose.
        s = lax.dot_general(q_proj, kp, (((1,), (1,)), ((), ())),
                            preferred_element_type=jnp.float32) * scale
        s = s - jnp.max(s, axis=-1, keepdims=True)
        p = jnp.exp(s)
        p = p * pl.reciprocal(jnp.sum(p, axis=-1, keepdims=True), approx=False)
        ctx = jnp.dot(p, vp, preferred_element_type=jnp.float32)
        return jnp.dot(ctx, wo, preferred_element_type=jnp.float32) + bo

    # First n_iters - 1 chained attention steps at full query width; the
    # attention output becomes the next step's key/value sequence.
    cur = kv0
    for _ in range(n_iters - 1):
        kp, vp = kv_proj(cur)
        cur = attn_core(qp, kp, vp)

    # Final step: only query token 0 contributes to the output feature.
    kp, vp = kv_proj(cur)
    feat = attn_core(qp[0:1], kp, vp)                                    # (1, E)
    o_ref[0, 0] = feat.astype(o_ref.dtype)


def _pack_params(ref_params, tgt_params):
    """Stack both attention modules' params into MXU-friendly layouts.

    Returns:
      w_all: (2, 4, E, E)  pre-transposed [Wq^T, Wk^T, Wv^T, Wo^T] per branch
      b_all: (2, 4, 1, E)  [bq, bk, bv, bo] per branch
    """
    def one(params):
        wq, wk, wv, wo, bq, bk, bv, bo = params
        w = jnp.stack([wq.T, wk.T, wv.T, wo.T])          # (4, E, E)
        b = jnp.stack([bq, bk, bv, bo])                  # (4, 1, E)
        return w, b

    w0, b0 = one(ref_params)
    w1, b1 = one(tgt_params)
    return jnp.stack([w0, w1]), jnp.stack([b0, b1])


def twin_attention_compositor(reference_embeddings, target_embeddings,
                              ref_params, tgt_params, *, n_iters=4):
    """Fused forward pass of TwinAttentionCompositorBLIP2.  Returns (B, E)."""
    B, L, E = reference_embeddings.shape
    scale = 1.0 / math.sqrt(E)

    # stacked[0] = reference, stacked[1] = target.  Branch 0 queries with the
    # reference and attends into the target; branch 1 is the mirror.
    stacked = jnp.stack([reference_embeddings, target_embeddings])      # (2,B,L,E)
    w_all, b_all = _pack_params(ref_params, tgt_params)

    kernel = partial(_twin_attention_kernel, scale=scale, n_iters=n_iters)

    out = pl.pallas_call(
        kernel,
        out_shape=jax.ShapeDtypeStruct((2, B, 1, E), jnp.float32),
        grid_spec=pltpu.PrefetchScalarGridSpec(
            num_scalar_prefetch=0,
            grid=(2, B),                                  # (branch, batch)
            in_specs=[
                # query: branch br uses stacked[br]
                pl.BlockSpec((1, 1, L, E), lambda br, b: (br, b, 0, 0)),
                # initial key/value: the other modality, stacked[1 - br]
                pl.BlockSpec((1, 1, L, E), lambda br, b: (1 - br, b, 0, 0)),
                # per-branch stacked (pre-transposed) weights / biases; the
                # block index only depends on the outer axis, so they are not
                # re-fetched across consecutive batch steps.
                pl.BlockSpec((1, 4, E, E), lambda br, b: (br, 0, 0, 0)),
                pl.BlockSpec((1, 4, 1, E), lambda br, b: (br, 0, 0, 0)),
            ],
            out_specs=pl.BlockSpec((1, 1, 1, E), lambda br, b: (br, b, 0, 0)),
        ),
        compiler_params=pltpu.CompilerParams(
            dimension_semantics=("parallel", "parallel")),
    )(stacked, stacked, w_all, b_all)

    # Epilogue: average the two branches' token-0 features (tiny (B, E) op).
    return (out[0, :, 0, :] + out[1, :, 0, :]) * 0.5


def init_mha_params(key, embedding_dim):
    """Deterministic synthetic parameters for one nn.MultiheadAttention(E, 1)."""
    E = embedding_dim
    keys = jax.random.split(key, 5)
    wq = jax.random.normal(keys[0], (E, E), jnp.float32) * 0.05
    wk = jax.random.normal(keys[1], (E, E), jnp.float32) * 0.05
    wv = jax.random.normal(keys[2], (E, E), jnp.float32) * 0.05
    wo = jax.random.normal(keys[3], (E, E), jnp.float32) * 0.05
    b = jax.random.normal(keys[4], (4, E), jnp.float32) * 0.01
    bq, bk, bv, bo = (b[i:i + 1] for i in range(4))      # each (1, E)
    return (wq, wk, wv, wo, bq, bk, bv, bo)


# --------------------------- pure-JAX reference --------------------------- #

def _mha_ref(q, k, v, params):
    wq, wk, wv, wo, bq, bk, bv, bo = params
    E = q.shape[-1]
    qp = q @ wq.T + bq
    kp = k @ wk.T + bk
    vp = v @ wv.T + bv
    s = jnp.einsum("bqe,bke->bqk", qp, kp) / math.sqrt(E)
    p = jax.nn.softmax(s, axis=-1)
    ctx = jnp.einsum("bqk,bke->bqe", p, vp)
    return ctx @ wo.T + bo


def _forward_ref(ref_emb, tgt_emb, ref_params, tgt_params):
    o1 = _mha_ref(ref_emb, tgt_emb, tgt_emb, ref_params)
    for _ in range(3):
        o1 = _mha_ref(ref_emb, o1, o1, ref_params)
    o2 = _mha_ref(tgt_emb, ref_emb, ref_emb, tgt_params)
    for _ in range(3):
        o2 = _mha_ref(tgt_emb, o2, o2, tgt_params)
    return (o1[:, 0, :] + o2[:, 0, :]) / 2.0


if __name__ == "__main__":
    B, L, E = 2, 8, 32
    key = jax.random.PRNGKey(0)
    k_ref, k_tgt, k_p1, k_p2 = jax.random.split(key, 4)

    reference_embeddings = jax.random.normal(k_ref, (B, L, E), jnp.float32)
    target_embeddings = jax.random.normal(k_tgt, (B, L, E), jnp.float32)

    ref_params = init_mha_params(k_p1, E)   # reference_as_query_attention
    tgt_params = init_mha_params(k_p2, E)   # target_as_query_attention

    out = twin_attention_compositor(reference_embeddings, target_embeddings,
                                    ref_params, tgt_params)
    out = jax.block_until_ready(out)

    expected = _forward_ref(reference_embeddings, target_embeddings,
                            ref_params, tgt_params)
    assert out.shape == (B, E)
    assert jnp.allclose(out, expected, atol=1e-4, rtol=1e-4), (
        float(jnp.max(jnp.abs(out - expected))))

    print("KERNEL_OK")
</pallas_src>

<mosaic_0001>
module attributes {stable_mosaic.version = 11 : i64} {
  func.func @_twin_attention_kernel(%arg0: i32, %arg1: i32, %arg2: memref<1x1x8x32xf32, #tpu.memory_space<vmem>>, %arg3: memref<1x1x8x32xf32, #tpu.memory_space<vmem>>, %arg4: memref<1x4x32x32xf32, #tpu.memory_space<vmem>>, %arg5: memref<1x4x1x32xf32, #tpu.memory_space<vmem>>, %arg6: memref<1x1x1x32xf32, #tpu.memory_space<vmem>>) attributes {dimension_semantics = [#tpu.dimension_semantics<parallel>, #tpu.dimension_semantics<parallel>], iteration_bounds = array<i64: 2, 2>, scalar_prefetch = 0 : i64, scratch_operands = 0 : i64, tpu.core_type = #tpu.core_type<tc>, window_params = [{transform_indices = @transform_0, window_bounds = array<i64: 1, 1, 8, 32>}, {transform_indices = @transform_1, window_bounds = array<i64: 1, 1, 8, 32>}, {transform_indices = @transform_2, window_bounds = array<i64: 1, 4, 32, 32>}, {transform_indices = @transform_3, window_bounds = array<i64: 1, 4, 1, 32>}, {transform_indices = @transform_4, window_bounds = array<i64: 1, 1, 1, 32>}]} {
    %c0 = arith.constant 0 : index
    %c0_0 = arith.constant 0 : index
    %c0_1 = arith.constant 0 : index
    %c0_2 = arith.constant 0 : index
    %0 = vector.load %arg2[%c0, %c0_0, %c0_1, %c0_2] : memref<1x1x8x32xf32, #tpu.memory_space<vmem>>, vector<1x1x8x32xf32>
    %1 = vector.shape_cast %0 : vector<1x1x8x32xf32> to vector<8x32xf32>
    %c0_3 = arith.constant 0 : index
    %c0_4 = arith.constant 0 : index
    %c0_5 = arith.constant 0 : index
    %c0_6 = arith.constant 0 : index
    %2 = vector.load %arg3[%c0_3, %c0_4, %c0_5, %c0_6] : memref<1x1x8x32xf32, #tpu.memory_space<vmem>>, vector<1x1x8x32xf32>
    %3 = vector.shape_cast %2 : vector<1x1x8x32xf32> to vector<8x32xf32>
    %c0_7 = arith.constant 0 : index
    %c0_8 = arith.constant 0 : index
    %c0_9 = arith.constant 0 : index
    %c0_10 = arith.constant 0 : index
    %4 = vector.load %arg4[%c0_7, %c0_8, %c0_9, %c0_10] : memref<1x4x32x32xf32, #tpu.memory_space<vmem>>, vector<1x1x32x32xf32>
    %5 = vector.shape_cast %4 : vector<1x1x32x32xf32> to vector<32x32xf32>
    %c0_11 = arith.constant 0 : index
    %c1 = arith.constant 1 : index
    %c0_12 = arith.constant 0 : index
    %c0_13 = arith.constant 0 : index
    %6 = vector.load %arg4[%c0_11, %c1, %c0_12, %c0_13] : memref<1x4x32x32xf32, #tpu.memory_space<vmem>>, vector<1x1x32x32xf32>
    %7 = vector.shape_cast %6 : vector<1x1x32x32xf32> to vector<32x32xf32>
    %c0_14 = arith.constant 0 : index
    %c2 = arith.constant 2 : index
    %c0_15 = arith.constant 0 : index
    %c0_16 = arith.constant 0 : index
    %8 = vector.load %arg4[%c0_14, %c2, %c0_15, %c0_16] : memref<1x4x32x32xf32, #tpu.memory_space<vmem>>, vector<1x1x32x32xf32>
    %9 = vector.shape_cast %8 : vector<1x1x32x32xf32> to vector<32x32xf32>
    %c0_17 = arith.constant 0 : index
    %c3 = arith.constant 3 : index
    %c0_18 = arith.constant 0 : index
    %c0_19 = arith.constant 0 : index
    %10 = vector.load %arg4[%c0_17, %c3, %c0_18, %c0_19] : memref<1x4x32x32xf32, #tpu.memory_space<vmem>>, vector<1x1x32x32xf32>
    %11 = vector.shape_cast %10 : vector<1x1x32x32xf32> to vector<32x32xf32>
    %c0_20 = arith.constant 0 : index
    %c0_21 = arith.constant 0 : index
    %c0_22 = arith.constant 0 : index
    %c0_23 = arith.constant 0 : index
    %12 = vector.load %arg5[%c0_20, %c0_21, %c0_22, %c0_23] : memref<1x4x1x32xf32, #tpu.memory_space<vmem>>, vector<1x1x1x32xf32>
    %13 = vector.shape_cast %12 : vector<1x1x1x32xf32> to vector<1x32xf32>
    %c0_24 = arith.constant 0 : index
    %c1_25 = arith.constant 1 : index
    %c0_26 = arith.constant 0 : index
    %c0_27 = arith.constant 0 : index
    %14 = vector.load %arg5[%c0_24, %c1_25, %c0_26, %c0_27] : memref<1x4x1x32xf32, #tpu.memory_space<vmem>>, vector<1x1x1x32xf32>
    %15 = vector.shape_cast %14 : vector<1x1x1x32xf32> to vector<1x32xf32>
    %c0_28 = arith.constant 0 : index
    %c2_29 = arith.constant 2 : index
    %c0_30 = arith.constant 0 : index
    %c0_31 = arith.constant 0 : index
    %16 = vector.load %arg5[%c0_28, %c2_29, %c0_30, %c0_31] : memref<1x4x1x32xf32, #tpu.memory_space<vmem>>, vector<1x1x1x32xf32>
    %17 = vector.shape_cast %16 : vector<1x1x1x32xf32> to vector<1x32xf32>
    %c0_32 = arith.constant 0 : index
    %c3_33 = arith.constant 3 : index
    %c0_34 = arith.constant 0 : index
    %c0_35 = arith.constant 0 : index
    %18 = vector.load %arg5[%c0_32, %c3_33, %c0_34, %c0_35] : memref<1x4x1x32xf32, #tpu.memory_space<vmem>>, vector<1x1x1x32xf32>
    %19 = vector.shape_cast %18 : vector<1x1x1x32xf32> to vector<1x32xf32>
    %cst = arith.constant dense<0.000000e+00> : vector<8x32xf32>
    %20 = tpu.matmul %1, %5, %cst {dimension_numbers = #tpu.dot_dimension_numbers<[1], [0], [0], [1], [0, 0, 1, 1], [], []>} : vector<8x32xf32>, vector<32x32xf32>, vector<8x32xf32> -> vector<8x32xf32>
    %21 = vector.broadcast %13 : vector<1x32xf32> to vector<8x32xf32>
    %22 = arith.addf %20, %21 : vector<8x32xf32>
    %23 = vector.shape_cast %15 : vector<1x32xf32> to vector<1x32xf32>
    %24 = vector.broadcast %23 : vector<1x32xf32> to vector<8x32xf32>
    %25 = vector.shape_cast %17 : vector<1x32xf32> to vector<1x32xf32>
    %26 = vector.broadcast %25 : vector<1x32xf32> to vector<8x32xf32>
    %cst_36 = arith.constant dense<0.000000e+00> : vector<8x32xf32>
    %27 = tpu.matmul %3, %7, %cst_36 {dimension_numbers = #tpu.dot_dimension_numbers<[1], [0], [0], [1], [0, 0, 1, 1], [], []>} : vector<8x32xf32>, vector<32x32xf32>, vector<8x32xf32> -> vector<8x32xf32>
    %28 = arith.addf %27, %24 : vector<8x32xf32>
    %cst_37 = arith.constant dense<0.000000e+00> : vector<8x32xf32>
    %29 = tpu.matmul %3, %9, %cst_37 {dimension_numbers = #tpu.dot_dimension_numbers<[1], [0], [0], [1], [0, 0, 1, 1], [], []>} : vector<8x32xf32>, vector<32x32xf32>, vector<8x32xf32> -> vector<8x32xf32>
    %30 = arith.addf %29, %26 : vector<8x32xf32>
    %cst_38 = arith.constant dense<0.000000e+00> : vector<8x8xf32>
    %31 = tpu.matmul %22, %28, %cst_38 {dimension_numbers = #tpu.dot_dimension_numbers<[1], [1], [0], [0], [0, 0, 1, 0], [], []>} : vector<8x32xf32>, vector<8x32xf32>, vector<8x8xf32> -> vector<8x8xf32>
    %cst_39 = arith.constant 0.176776692 : f32
    %32 = vector.broadcast %cst_39 : f32 to vector<8x8xf32>
    %33 = arith.mulf %31, %32 : vector<8x8xf32>
    %cst_40 = arith.constant dense<0xFF800000> : vector<8xf32>
    %34 = vector.multi_reduction <maximumf>, %33, %cst_40 [1] : vector<8x8xf32> to vector<8xf32>
    %35 = vector.shape_cast %34 : vector<8xf32> to vector<8x1xf32>
    %36 = vector.broadcast %35 : vector<8x1xf32> to vector<8x8xf32>
    %37 = arith.subf %33, %36 : vector<8x8xf32>
    %38 = math.exp %37 : vector<8x8xf32>
    %cst_41 = arith.constant dense<0.000000e+00> : vector<8xf32>
    %39 = vector.multi_reduction <add>, %38, %cst_41 [1] : vector<8x8xf32> to vector<8xf32>
    %40 = vector.shape_cast %39 : vector<8xf32> to vector<8x1xf32>
    %41 = tpu.reciprocal %40 : vector<8x1xf32> -> vector<8x1xf32>
    %42 = vector.broadcast %41 : vector<8x1xf32> to vector<8x8xf32>
    %43 = arith.mulf %38, %42 : vector<8x8xf32>
    %cst_42 = arith.constant dense<0.000000e+00> : vector<8x32xf32>
    %44 = tpu.matmul %43, %30, %cst_42 {dimension_numbers = #tpu.dot_dimension_numbers<[1], [0], [0], [1], [0, 0, 1, 1], [], []>} : vector<8x8xf32>, vector<8x32xf32>, vector<8x32xf32> -> vector<8x32xf32>
    %cst_43 = arith.constant dense<0.000000e+00> : vector<8x32xf32>
    %45 = tpu.matmul %44, %11, %cst_43 {dimension_numbers = #tpu.dot_dimension_numbers<[1], [0], [0], [1], [0, 0, 1, 1], [], []>} : vector<8x32xf32>, vector<32x32xf32>, vector<8x32xf32> -> vector<8x32xf32>
    %46 = vector.broadcast %19 : vector<1x32xf32> to vector<8x32xf32>
    %47 = arith.addf %45, %46 : vector<8x32xf32>
    %cst_44 = arith.constant dense<0.000000e+00> : vector<8x32xf32>
    %48 = tpu.matmul %47, %7, %cst_44 {dimension_numbers = #tpu.dot_dimension_numbers<[1], [0], [0], [1], [0, 0, 1, 1], [], []>} : vector<8x32xf32>, vector<32x32xf32>, vector<8x32xf32> -> vector<8x32xf32>
    %49 = arith.addf %48, %24 : vector<8x32xf32>
    %cst_45 = arith.constant dense<0.000000e+00> : vector<8x32xf32>
    %50 = tpu.matmul %47, %9, %cst_45 {dimension_numbers = #tpu.dot_dimension_numbers<[1], [0], [0], [1], [0, 0, 1, 1], [], []>} : vector<8x32xf32>, vector<32x32xf32>, vector<8x32xf32> -> vector<8x32xf32>
    %51 = arith.addf %50, %26 : vector<8x32xf32>
    %cst_46 = arith.constant dense<0.000000e+00> : vector<8x8xf32>
    %52 = tpu.matmul %22, %49, %cst_46 {dimension_numbers = #tpu.dot_dimension_numbers<[1], [1], [0], [0], [0, 0, 1, 0], [], []>} : vector<8x32xf32>, vector<8x32xf32>, vector<8x8xf32> -> vector<8x8xf32>
    %cst_47 = arith.constant 0.176776692 : f32
    %53 = vector.broadcast %cst_47 : f32 to vector<8x8xf32>
    %54 = arith.mulf %52, %53 : vector<8x8xf32>
    %cst_48 = arith.constant dense<0xFF800000> : vector<8xf32>
    %55 = vector.multi_reduction <maximumf>, %54, %cst_48 [1] : vector<8x8xf32> to vector<8xf32>
    %56 = vector.shape_cast %55 : vector<8xf32> to vector<8x1xf32>
    %57 = vector.broadcast %56 : vector<8x1xf32> to vector<8x8xf32>
    %58 = arith.subf %54, %57 : vector<8x8xf32>
    %59 = math.exp %58 : vector<8x8xf32>
    %cst_49 = arith.constant dense<0.000000e+00> : vector<8xf32>
    %60 = vector.multi_reduction <add>, %59, %cst_49 [1] : vector<8x8xf32> to vector<8xf32>
    %61 = vector.shape_cast %60 : vector<8xf32> to vector<8x1xf32>
    %62 = tpu.reciprocal %61 : vector<8x1xf32> -> vector<8x1xf32>
    %63 = vector.broadcast %62 : vector<8x1xf32> to vector<8x8xf32>
    %64 = arith.mulf %59, %63 : vector<8x8xf32>
    %cst_50 = arith.constant dense<0.000000e+00> : vector<8x32xf32>
    %65 = tpu.matmul %64, %51, %cst_50 {dimension_numbers = #tpu.dot_dimension_numbers<[1], [0], [0], [1], [0, 0, 1, 1], [], []>} : vector<8x8xf32>, vector<8x32xf32>, vector<8x32xf32> -> vector<8x32xf32>
    %cst_51 = arith.constant dense<0.000000e+00> : vector<8x32xf32>
    %66 = tpu.matmul %65, %11, %cst_51 {dimension_numbers = #tpu.dot_dimension_numbers<[1], [0], [0], [1], [0, 0, 1, 1], [], []>} : vector<8x32xf32>, vector<32x32xf32>, vector<8x32xf32> -> vector<8x32xf32>
    %67 = vector.broadcast %19 : vector<1x32xf32> to vector<8x32xf32>
    %68 = arith.addf %66, %67 : vector<8x32xf32>
    %cst_52 = arith.constant dense<0.000000e+00> : vector<8x32xf32>
    %69 = tpu.matmul %68, %7, %cst_52 {dimension_numbers = #tpu.dot_dimension_numbers<[1], [0], [0], [1], [0, 0, 1, 1], [], []>} : vector<8x32xf32>, vector<32x32xf32>, vector<8x32xf32> -> vector<8x32xf32>
    %70 = arith.addf %69, %24 : vector<8x32xf32>
    %cst_53 = arith.constant dense<0.000000e+00> : vector<8x32xf32>
    %71 = tpu.matmul %68, %9, %cst_53 {dimension_numbers = #tpu.dot_dimension_numbers<[1], [0], [0], [1], [0, 0, 1, 1], [], []>} : vector<8x32xf32>, vector<32x32xf32>, vector<8x32xf32> -> vector<8x32xf32>
    %72 = arith.addf %71, %26 : vector<8x32xf32>
    %cst_54 = arith.constant dense<0.000000e+00> : vector<8x8xf32>
    %73 = tpu.matmul %22, %70, %cst_54 {dimension_numbers = #tpu.dot_dimension_numbers<[1], [1], [0], [0], [0, 0, 1, 0], [], []>} : vector<8x32xf32>, vector<8x32xf32>, vector<8x8xf32> -> vector<8x8xf32>
    %cst_55 = arith.constant 0.176776692 : f32
    %74 = vector.broadcast %cst_55 : f32 to vector<8x8xf32>
    %75 = arith.mulf %73, %74 : vector<8x8xf32>
    %cst_56 = arith.constant dense<0xFF800000> : vector<8xf32>
    %76 = vector.multi_reduction <maximumf>, %75, %cst_56 [1] : vector<8x8xf32> to vector<8xf32>
    %77 = vector.shape_cast %76 : vector<8xf32> to vector<8x1xf32>
    %78 = vector.broadcast %77 : vector<8x1xf32> to vector<8x8xf32>
    %79 = arith.subf %75, %78 : vector<8x8xf32>
    %80 = math.exp %79 : vector<8x8xf32>
    %cst_57 = arith.constant dense<0.000000e+00> : vector<8xf32>
    %81 = vector.multi_reduction <add>, %80, %cst_57 [1] : vector<8x8xf32> to vector<8xf32>
    %82 = vector.shape_cast %81 : vector<8xf32> to vector<8x1xf32>
    %83 = tpu.reciprocal %82 : vector<8x1xf32> -> vector<8x1xf32>
    %84 = vector.broadcast %83 : vector<8x1xf32> to vector<8x8xf32>
    %85 = arith.mulf %80, %84 : vector<8x8xf32>
    %cst_58 = arith.constant dense<0.000000e+00> : vector<8x32xf32>
    %86 = tpu.matmul %85, %72, %cst_58 {dimension_numbers = #tpu.dot_dimension_numbers<[1], [0], [0], [1], [0, 0, 1, 1], [], []>} : vector<8x8xf32>, vector<8x32xf32>, vector<8x32xf32> -> vector<8x32xf32>
    %cst_59 = arith.constant dense<0.000000e+00> : vector<8x32xf32>
    %87 = tpu.matmul %86, %11, %cst_59 {dimension_numbers = #tpu.dot_dimension_numbers<[1], [0], [0], [1], [0, 0, 1, 1], [], []>} : vector<8x32xf32>, vector<32x32xf32>, vector<8x32xf32> -> vector<8x32xf32>
    %88 = vector.broadcast %19 : vector<1x32xf32> to vector<8x32xf32>
    %89 = arith.addf %87, %88 : vector<8x32xf32>
    %cst_60 = arith.constant dense<0.000000e+00> : vector<8x32xf32>
    %90 = tpu.matmul %89, %7, %cst_60 {dimension_numbers = #tpu.dot_dimension_numbers<[1], [0], [0], [1], [0, 0, 1, 1], [], []>} : vector<8x32xf32>, vector<32x32xf32>, vector<8x32xf32> -> vector<8x32xf32>
    %91 = arith.addf %90, %24 : vector<8x32xf32>
    %cst_61 = arith.constant dense<0.000000e+00> : vector<8x32xf32>
    %92 = tpu.matmul %89, %9, %cst_61 {dimension_numbers = #tpu.dot_dimension_numbers<[1], [0], [0], [1], [0, 0, 1, 1], [], []>} : vector<8x32xf32>, vector<32x32xf32>, vector<8x32xf32> -> vector<8x32xf32>
    %93 = arith.addf %92, %26 : vector<8x32xf32>
    %94 = vector.extract_strided_slice %22 {offsets = [0, 0], sizes = [1, 32], strides = [1, 1]} : vector<8x32xf32> to vector<1x32xf32>
    %cst_62 = arith.constant dense<0.000000e+00> : vector<1x8xf32>
    %95 = tpu.matmul %94, %91, %cst_62 {dimension_numbers = #tpu.dot_dimension_numbers<[1], [1], [0], [0], [0, 0, 1, 0], [], []>} : vector<1x32xf32>, vector<8x32xf32>, vector<1x8xf32> -> vector<1x8xf32>
    %cst_63 = arith.constant 0.176776692 : f32
    %96 = vector.broadcast %cst_63 : f32 to vector<1x8xf32>
    %97 = arith.mulf %95, %96 : vector<1x8xf32>
    %cst_64 = arith.constant dense<0xFF800000> : vector<1xf32>
    %98 = vector.multi_reduction <maximumf>, %97, %cst_64 [1] : vector<1x8xf32> to vector<1xf32>
    %99 = vector.shape_cast %98 : vector<1xf32> to vector<1x1xf32>
    %100 = vector.broadcast %99 : vector<1x1xf32> to vector<1x8xf32>
    %101 = arith.subf %97, %100 : vector<1x8xf32>
    %102 = math.exp %101 : vector<1x8xf32>
    %cst_65 = arith.constant dense<0.000000e+00> : vector<1xf32>
    %103 = vector.multi_reduction <add>, %102, %cst_65 [1] : vector<1x8xf32> to vector<1xf32>
    %104 = vector.shape_cast %103 : vector<1xf32> to vector<1x1xf32>
    %105 = tpu.reciprocal %104 : vector<1x1xf32> -> vector<1x1xf32>
    %106 = vector.broadcast %105 : vector<1x1xf32> to vector<1x8xf32>
    %107 = arith.mulf %102, %106 : vector<1x8xf32>
    %cst_66 = arith.constant dense<0.000000e+00> : vector<1x32xf32>
    %108 = tpu.matmul %107, %93, %cst_66 {dimension_numbers = #tpu.dot_dimension_numbers<[1], [0], [0], [1], [0, 0, 1, 1], [], []>} : vector<1x8xf32>, vector<8x32xf32>, vector<1x32xf32> -> vector<1x32xf32>
    %cst_67 = arith.constant dense<0.000000e+00> : vector<1x32xf32>
    %109 = tpu.matmul %108, %11, %cst_67 {dimension_numbers = #tpu.dot_dimension_numbers<[1], [0], [0], [1], [0, 0, 1, 1], [], []>} : vector<1x32xf32>, vector<32x32xf32>, vector<1x32xf32> -> vector<1x32xf32>
    %110 = arith.addf %109, %19 : vector<1x32xf32>
    %c0_68 = arith.constant 0 : index
    %c0_69 = arith.constant 0 : index
    %c0_70 = arith.constant 0 : index
    %c0_71 = arith.constant 0 : index
    %111 = vector.load %arg6[%c0_68, %c0_69, %c0_70, %c0_71] : memref<1x1x1x32xf32, #tpu.memory_space<vmem>>, vector<1x1x1x32xf32>
    %112 = vector.shape_cast %111 : vector<1x1x1x32xf32> to vector<1x32xf32>
    %113 = vector.shape_cast %110 : vector<1x32xf32> to vector<1x1x1x32xf32>
    tpu.vector_store %arg6[%c0_68, %c0_69, %c0_70, %c0_71], %113 {strides = array<i32>} : memref<1x1x1x32xf32, #tpu.memory_space<vmem>>, vector<1x1x1x32xf32>,
    return
  }
  func.func @transform_0(%arg0: i32, %arg1: i32) -> (i32, i32, i32, i32) {
    %c0_i32 = arith.constant 0 : i32
    %c0_i32_0 = arith.constant 0 : i32
    %c0_i32_1 = arith.constant 0 : i32
    return %arg0, %arg1, %c0_i32, %c0_i32_0 : i32, i32, i32, i32
  }
  func.func @transform_1(%arg0: i32, %arg1: i32) -> (i32, i32, i32, i32) {
    %c1_i32 = arith.constant 1 : i32
    %0 = arith.subi %c1_i32, %arg0 : i32
    %c0_i32 = arith.constant 0 : i32
    %c0_i32_0 = arith.constant 0 : i32
    %c0_i32_1 = arith.constant 0 : i32
    return %0, %arg1, %c0_i32, %c0_i32_0 : i32, i32, i32, i32
  }
  func.func @transform_2(%arg0: i32, %arg1: i32) -> (i32, i32, i32, i32) {
    %c0_i32 = arith.constant 0 : i32
    %c0_i32_0 = arith.constant 0 : i32
    %c0_i32_1 = arith.constant 0 : i32
    %c0_i32_2 = arith.constant 0 : i32
    return %arg0, %c0_i32, %c0_i32_0, %c0_i32_1 : i32, i32, i32, i32
  }
  func.func @transform_3(%arg0: i32, %arg1: i32) -> (i32, i32, i32, i32) {
    %c0_i32 = arith.constant 0 : i32
    %c0_i32_0 = arith.constant 0 : i32
    %c0_i32_1 = arith.constant 0 : i32
    %c0_i32_2 = arith.constant 0 : i32
    return %arg0, %c0_i32, %c0_i32_0, %c0_i32_1 : i32, i32, i32, i32
  }
  func.func @transform_4(%arg0: i32, %arg1: i32) -> (i32, i32, i32, i32) {
    %c0_i32 = arith.constant 0 : i32
    %c0_i32_0 = arith.constant 0 : i32
    %c0_i32_1 = arith.constant 0 : i32
    return %arg0, %arg1, %c0_i32, %c0_i32_0 : i32, i32, i32, i32
  }
}

</mosaic_0001>

<bundles_post_ra>
// kernel: tpu_custom_call.1
= control target key start
LH: loop header
LB: loop body
LE: loop exit
PB: predicated region body
PF: predicated region fallthrough
CT: control target
= control target key end

     0   :  { %s2150_s0 = inlined_call_operand.hbm [shape: f32[2,2,8,32], index: 0, kind: input, shape index: {}]   ;;  %s2151_s1 = inlined_call_operand.hbm [shape: f32[2,2,8,32], index: 1, kind: input, shape index: {}]   ;;  %s2152_s2 = inlined_call_operand.hbm [shape: f32[2,4,32,32], index: 2, kind: input, shape index: {}]   ;;  %s2153_s3 = inlined_call_operand.hbm [shape: f32[2,4,1,32], index: 3, kind: input, shape index: {}]   ;;  %s2154_s4 = inlined_call_operand.hbm [shape: f32[2,2,1,32], index: 4, kind: output, shape index: {}]  }
   0x1   :  { %2167 = sst [smem:[#allocation30_spill]] %s2150_s0 }
   0x2   :  { %2168 = sst [smem:[#allocation31_spill]] %s2151_s1 }
   0x3   :  { %2169 = sst [smem:[#allocation32_spill]] %s2154_s4 }
   0x4   :  { %9 = vsyncpa [#allocation3], 0 }
   0x5   :  { %11 = vsyncpa [#allocation3 + $0x1], 0 }
   0x6   :  { %12 = vsyncpa [#allocation6], 0 }
   0x7   :  { %14 = vsyncpa [#allocation6 + $0x1], 0 }
   0x8   :  { %15 = vsyncpa [#allocation9], 0 }
   0x9   :  { %17 = vsyncpa [#allocation9 + $0x1], 0 }
   0xa   :  { %18 = vsyncpa [#allocation4], 0 }
   0xb   :  { %20 = vsyncpa [#allocation4 + $0x1], 0  ;;  %s1680_s15 = smov 0   ;;  %s1682_s16 = smov 0  }
   0xc   :  { %s1684_s17 = smov 0   ;;  %s1686_s18 = smov 0  }
   0xd   :  { %s1688_s19 = smov 0   ;;  %s1690_s20 = smov 0  }
   0xe   :  { %s1692_s21 = smov 0   ;;  %s1694_s22 = smov 0  }
   0xf   :  { %s1696_s23 = smov 0   ;;  %s1698_s24 = smov 0  }
  0x10   :  { %s1700_s25 = smov 0   ;;  %s1702_s26 = smov 0  }
  0x11   :  { %s1704_s27 = smov 0   ;;  %s1706_s28 = smov 0  }
  0x12 LB: > { %2170 = sst [smem:[#allocation16_spill]] %s1605_s17  ;;  %s1749_s29 = sadd.s32 4294967295, %s1649_s28   ;;  %s1649_s28 = sphi %s1706_s28, %s26_s28   ;;  %s1645_s27 = sphi %s1704_s27, %s2222_s27   ;;  %s1641_s26 = sphi %s1702_s26, %s2221_s26   ;;  %s1637_s25 = sphi %s1700_s25, %s2220_s25   ;;  %s1633_s24 = sphi %s1698_s24, %s2211_s24   ;;  %s1629_s23 = sphi %s1696_s23, %s2210_s23   ;;  %s1625_s22 = sphi %s1694_s22, %s2219_s22   ;;  %s1621_s21 = sphi %s1692_s21, %s2218_s21   ;;  %s1617_s20 = sphi %s1690_s20, %s2208_s20   ;;  %s1613_s19 = sphi %s1688_s19, %s2217_s19   ;;  %s1609_s18 = sphi %s1686_s18, %s2216_s18   ;;  %s1605_s17 = sphi %s1684_s17, %s2206_s17   ;;  %s1601_s16 = sphi %s1682_s16, %s2215_s16   ;;  %s1597_s15 = sphi %s1680_s15, %s2214_s15  }
  0x13   : > { %2171 = sst [smem:[#allocation17_spill]] %s1617_s20  ;;  %s35_s30 = sadd.s32 1, %s1641_s26 }
  0x14   : > { %2172 = sst [smem:[#allocation18_spill]] %s1621_s21  ;;  %p36_p0 = scmp.ge.s32.totalorder %s35_s30, 2 }
  0x15   : > { %2173 = sst [smem:[#allocation19_spill]] %s1629_s23  ;;  %s38_s5 = sadd.s32 1, %s1645_s27 }
  0x16   : > { %2174 = sst [smem:[#allocation20_spill]] %s1633_s24  ;;  %p55_p1 = scmp.eq.s32.totalorder %s1649_s28, 0 }
  0x17   : > { %2175 = sst [smem:[#allocation21_spill]] %s1637_s25  ;;  %p61_p2 = scmp.eq.s32.totalorder %s1749_s29, 0 }
  0x18   : > { %2176 = sst [smem:[#allocation22_spill]] %s1641_s26  ;;  %s2224_s30 = smov (%p36_p0, %s35_s30), 0 }
  0x19   : > { %2177 = sst [smem:[#allocation23_spill]] %s2224_s30  ;;  %s2226_s5 = smov (!%p36_p0, %s38_s5), %s1645_s27 }
  0x1a   : > { %s43_s6 = ssub.s32 %s1641_s26, %s2224_s30  ;;  %s70_s7 = ssub.s32 1, %s1645_s27 }
  0x1b   : > { %p40_p3 = scmp.ge.s32.totalorder %s2226_s5, 2  ;;  %s77_s8 = sadd.s32 1, %s1617_s20 }
  0x1c   : > { %p84_p4 = scmp.ne.s32.totalorder %s1617_s20, %s1613_s19  ;;  %p90_p5 = scmp.ne.s32.totalorder %s1613_s19, %s1609_s18 }
  0x1d   : > { %s2228_s5 = smov (%p40_p3, %s2226_s5), 0  ;;  %s103_s4 = sadd.s32 1, %s1605_s17 }
  0x1e   : > { %2178 = sst [smem:[#allocation24_spill]] %s2228_s5  ;;  %p1769_p6 = por %p84_p4, %p55_p1 }
  0x1f   : > { %p1775_p7 = por %p90_p5, %p61_p2  ;;  %s42_s11 = ssub.s32 %s1645_s27, %s2228_s5 }
  0x20   : > { %s71_s12 = ssub.s32 1, %s2228_s5  ;;  %s44_s13 = sor.u32 %s43_s6, %s42_s11 }
  0x21   : > { %s72_s14 = ssub.s32 %s70_s7, %s71_s12  ;;  %p1782_p8 = scmp.eq.s32.totalorder %s44_s13, 0 }
  0x22   : > { %s74_s30 = sor.u32 %s72_s14, %s43_s6  ;;  %p101_p10 = scmp.eq.s32.totalorder %s42_s11, 0 }
  0x23   : > { %p75_p9 = scmp.eq.s32.totalorder %s74_s30, 0  ;;  %p110_p11 = scmp.ne.s32.totalorder %s1605_s17, %s1601_s16 }
  0x24   : > { %s1793_s25 = scalar_select %p101_p10, %s1605_s17, %s103_s4  }
  0x25   : > { %s1790_s24 = scalar_select %p75_p9, %s1617_s20, %s77_s8  }
  0x26   : > { %2183 = sst [smem:[#allocation26_spill]] %s1793_s25  ;;  %p1797_p12 = por %p110_p11, %p55_p1 }
  0x27   : > { %2182 = sst [smem:[#allocation25_spill]] %s1790_s24  ;;  %p116_p13 = scmp.ne.s32.totalorder %s1601_s16, %s1597_s15 }
  0x28   : > { %p2160_p0 = scmp.lt.s32.totalorder %s1649_s28, 4  ;;  %s215_s6 = sand.u32 1, %s1649_s28  }
  0x29   : > { %p1806_p3 = por %p116_p13, %p61_p2  ;;  %s217_s4 = sand.u32 1, %s1617_s20  }
  0x2a   : > { %s1149_s8 = sshll.u32 %s217_s4, 3  ;;  %s1150_s11 = sshll.u32 %s70_s7, 1 }
  0x2b   : > { %s2185_s30 = scalar_select %p1806_p3, 1, 0 }
  0x2c   : > { %s224_s12 = sadd.s32 %s1641_s26, %s1150_s11  ;;  %s219_s15 = scalar_lea.vmem [#allocation5], %s1149_s8 }
  0x2d   : > { %2186 = sst [smem:[#allocation27_spill]] %s2185_s30  ;;  %s1151_s13 = sshll.u32 %s224_s12, 3 }
  0x2e   : > { %s230_s14 = sshll.u32 %s219_s15, 4  ;;  %s2187_s1 = sld [smem:[#allocation31_spill]]  ;;  %s231_s14 = int_to_ptr.vmem [resolvable:$true] %s230_s14 }
  0x2f   : > { %p1220_p4 = pnand %p2160_p0, %p1769_p6  ;;  %p1824_p5 = pnand %p2160_p0, %p1797_p12 }
  0x30   : > { %p1157_p9 = scmp.ge.s32.totalorder %s1649_s28, 1  ;;  %s1829_s24 = scalar_lea.sflag [#allocation6], %s215_s6 }
  0x31   : > { %p278_p10 = scmp.lt.s32.totalorder %s1649_s28, 5  ;;  %s1143_s9 = sadd.s32 4294967294, %s1649_s28  }
  0x32   : > { %s47_s5 = sadd.s32 1, %s1629_s23  ;;  %p54_p6 = scmp.ne.s32.totalorder %s1629_s23, %s1625_s22 }
  0x33   : > { %p1833_p11 = pnand %p1157_p9, %p278_p10  ;;  %p60_p13 = scmp.ne.s32.totalorder %s1625_s22, %s1621_s21 }
  0x34   : > { %s226_s30 = scalar_lea.hbm %s2187_s1, %s1151_s13  ;;  %p1848_p12 = por %p55_p1, %p54_p6 }
  0x35   : > { %s228_s7 = sshll.u32 %s226_s30, 4  ;;  %p174_p9 = scmp.eq.s32.totalorder %s1143_s9, 3  ;;  %s229_s7 = int_to_ptr.hbm [resolvable:$true] %s228_s7 }
  0x36   : > { %1222 = dma.hbm_to_vmem [thread:$0]  (!%p1220_p4), %s229_s7, 128, %s231_s14, %s1829_s24  }
  0x37   : > { %s1844_s30 = scalar_select %p1782_p8, %s1629_s23, %s47_s5  }
  0x38   : > { %p168_p4 = scmp.eq.s32.totalorder %s1749_s29, 3  ;;  %p1857_p10 = por %p61_p2, %p60_p13 }
  0x39   : > { %2190 = sst [smem:[#allocation28_spill]] %s1844_s30  ;;  %s194_s11 = sand.u32 1, %s1629_s23  }
  0x3a   : > { %p1862_p0 = por %p168_p4, %p54_p6  ;;  %p1866_p1 = por %p174_p9, %p60_p13 }
  0x3b   : > { %s1146_s13 = sshll.u32 %s194_s11, 3  ;;  %s1147_s15 = sshll.u32 %s1645_s27, 1 }
  0x3c   : > { %s2194_s12 = scalar_select %p1866_p1, 1, 0 }
  0x3d   : > { %s202_s14 = sadd.s32 %s1641_s26, %s1147_s15  ;;  %s198_s7 = scalar_lea.vmem [#allocation2], %s1146_s13 }
  0x3e   : > { %2195 = sst [smem:[#allocation29_spill]] %s2194_s12  ;;  %s208_s9 = sshll.u32 %s198_s7, 4  ;;  %s209_s9 = int_to_ptr.vmem [resolvable:$true] %s208_s9 }
  0x3f   : > { %s1148_s5 = sshll.u32 %s202_s14, 3  ;;  %s2196_s0 = sld [smem:[#allocation30_spill]] }
  0x40   : > { %p2197_p2 = scmp.lt.s32.totalorder %s1649_s28, 4  ;;  %s1880_s21 = sand.u32 1, %s1605_s17  }
  0x41   : > { %s195_s13 = scalar_lea.sflag [#allocation3], %s194_s11  ;;  %s1152_s15 = sshll.u32 %s1880_s21, 7 }
  0x42   : > { %p1217_p8 = pnand %p2197_p2, %p1848_p12  ;;  %s1205_s14 = sshll.u32 %s1645_s27, 7 }
  0x43   : > { %s246_s1 = scalar_lea.hbm %s2152_s2, %s1205_s14  ;;  %s241_s8 = scalar_lea.vmem [#allocation7], %s1152_s15 }
  0x44   : > { %s247_s30 = sshll.u32 %s246_s1, 4  ;;  %s1155_s17 = sshll.u32 %s1880_s21, 2  ;;  %s248_s30 = int_to_ptr.hbm [resolvable:$true] %s247_s30 }
  0x45   : > { %s204_s23 = scalar_lea.hbm %s2196_s0, %s1148_s5  ;;  %s249_s5 = sshll.u32 %s241_s8, 4  ;;  %s250_s5 = int_to_ptr.vmem [resolvable:$true] %s249_s5 }
  0x46   : > { %s206_s20 = sshll.u32 %s204_s23, 4  ;;  %s1651_s23 = smov 128   ;;  %s207_s20 = int_to_ptr.hbm [resolvable:$true] %s206_s20 }
  0x47   : > { %1219 = dma.hbm_to_vmem [thread:$0]  (!%p1217_p8), %s207_s20, 128, %s209_s9, %s195_s13  }
  0x48   : > { %s1652_s0 = smov 8   ;;  %s1156_s11 = sshll.u32 %s1645_s27, 2 }
  0x49   : > { %1225 = dma.hbm_to_vmem [thread:$0]  (!%p1824_p5), %s248_s30, 2048, %s250_s5, %s1829_s24, %s1651_s23, %s1651_s23, %s1652_s0  }
  0x4a   : > { %s267_s13 = scalar_lea.hbm %s2153_s3, %s1156_s11  ;;  %s263_s12 = scalar_lea.vmem [#allocation8], %s1155_s17 }
  0x4b   : > { %s270_s26 = sshll.u32 %s263_s12, 4  ;;  %s268_s14 = sshll.u32 %s267_s13, 4  ;;  %s271_s26 = int_to_ptr.vmem [resolvable:$true] %s270_s26  ;;  %s269_s14 = int_to_ptr.hbm [resolvable:$true] %s268_s14 }
  0x4c   : > { %s260_s15 = scalar_lea.sflag [#allocation9], %s1880_s21  ;;  %s1653_s7 = smov 16  }
  0x4d   : > { %s1654_s1 = smov 1   ;;  %282 = sbr.rel (%p1833_p11) target bundleno = 3261 (0xcbd), region = 36 }
  0x4e   : > { %1228 = dma.hbm_to_vmem [thread:$0]  (!%p1824_p5), %s269_s14, 64, %s271_s26, %s260_s15, %s1653_s7, %s1653_s7, %s1654_s1  }
  0x4f   : > { %s1901_s0 = sand.u32 (!%p1833_p11), 1, %s1625_s22  }
  0x50   : > { %s1158_s24 = sshll.u32 (!%p1833_p11), %s1901_s0, 3  ;;  %s285_s17 = scalar_lea.sflag (!%p1833_p11), [#allocation3], %s1901_s0 }
  0x51   : > { %s1905_s12 = scalar_lea.vmem (!%p1833_p11), [#allocation2], %s1158_s24 }
  0x52   : > { %1576 = dma.done.wait (%p1857_p10), %s285_s17, 128  }
  0x53   : > { %1578 = vsyncadd (%p1857_p10), %s285_s17, 4294967168  ;;  %s294_s21 = sand.u32 1, %s1749_s29   ;;  %s296_s4 = sand.u32 1, %s1613_s19  }
  0x54   : > { %s1913_s25 = sshll.u32 %s296_s4, 3  ;;  %s295_s30 = scalar_lea.sflag [#allocation6], %s294_s21 }
  0x55   : > { %s298_s8 = scalar_lea.vmem [#allocation5], %s1913_s25 }
  0x56   : > { %1580 = dma.done.wait (%p1775_p7), %s295_s30, 128  }
  0x57   : > { %1582 = vsyncadd (%p1775_p7), %s295_s30, 4294967168  ;;  %s306_s23 = sand.u32 1, %s1601_s16  }
  0x58   : > { %s1160_s6 = sshll.u32 %s306_s23, 7 }
  0x59   : > { %s1921_s11 = scalar_lea.vmem [#allocation7], %s1160_s6 }
  0x5a   : > { %1584 = dma.done.wait (%p1806_p3), %s295_s30, 2048  }
  0x5b   : > { %1586 = vsyncadd (%p1806_p3), %s295_s30, 4294965248  ;;  %s1161_s29 = sshll.u32 %s306_s23, 2  ;;  %s315_s20 = scalar_lea.sflag [#allocation9], %s306_s23 }
  0x5c   : > { %s1927_s9 = scalar_lea.vmem [#allocation8], %s1161_s29 }
  0x5d   : > { %1588 = dma.done.wait (%p1806_p3), %s315_s20, 64  }
  0x5e   : > { %1590 = vsyncadd (%p1806_p3), %s315_s20, 4294967232  ;;  %v1934_v0 = vld [vmem:[%s1921_s11 + $0x38] sm:$0xff]  ;;  %v1937_v1 = vld [vmem:[%s1921_s11 + $0x30] sm:$0xff]  ;;  %vm390_vm0 = vcmask 261120   ;;  %vm490_vm1 = vcmask 64512   ;;  %vm905_vm14 = vcmask 57344  }
  0x5f   : > { %v364_v2 = vld [vmem:[%s1921_s11 + $0x18] sm:$0xff]  ;;  %435 = vmatpush.msra.mxu1 %v1934_v0  ;;  %v363_v3 = vld [vmem:[%s1921_s11 + $0x10] sm:$0xff]  ;;  %v1943_v4 = vld [vmem:[%s1921_s11 + $0x28] sm:$0xff]  ;;  %s2199_s10 = sld [smem:[#allocation21_spill]]  ;;  %s357_s17 = scalar_lea.vmem [#allocation10], %s1901_s0 }
  0x60   : > { %406 = vmatpush.msra.mxu0 %v364_v2  ;;  %v362_v5 = vld [vmem:[%s1921_s11 + $0x8] sm:$0xff]  ;;  %v1948_v6 = vld [vmem:[%s1921_s11 + $0x20] sm:$0xff]  ;;  %v360_v8 = vld [vmem:[%s298_s8] sm:$0xff]  ;;  %s2200_s13 = sld [smem:[#allocation20_spill]]  ;;  %s979_s4 = scalar_lea.sflag [#allocation4], %s1901_s0 }
  0x61   : > { %436 = vmatpush.msra.mxu1 %v1937_v1  ;;  %v361_v7 = vld [vmem:[%s1921_s11] sm:$0xff]  ;;  %v1972_v19 = vld [vmem:[%s1921_s11 + $0x58] sm:$0xff]  ;;  %v1975_v20 = vld [vmem:[%s1921_s11 + $0x50] sm:$0xff]  ;;  %s2201_s1 = sld [smem:[#allocation32_spill]] }
  0x62   : > { %407 = vmatpush.msra.mxu0 %v363_v3  ;;  %v359_v9 = vld [vmem:[%s1905_s12] sm:$0xff]  ;;  %455 = vmatpush.msra.mxu2 %v1972_v19  ;;  %v2002_v31 = vld [vmem:[%s1921_s11 + $0x78] sm:$0xff]  ;;  %v2005_v32 = vld [vmem:[%s1921_s11 + $0x70] sm:$0xff]  ;;  %s991_s12 = sshll.u32 %s357_s17, 4  ;;  %s992_s12 = int_to_ptr.vmem [resolvable:$true] %s991_s12 }
  0x63   : > { %437 = vmatpush.msra.mxu1 %v1943_v4  ;;  %v1961_v10 = vld [vmem:[%s1927_s9 + $0x1] ss:$0 sm:$0xff]  ;;  %v1352_v11 = vld [vmem:[%s1927_s9] ss:$0 sm:$0xff]  ;;  %v1979_v21 = vld [vmem:[%s1921_s11 + $0x48] sm:$0xff] }
  0x64   : > { %408 = vmatpush.msra.mxu0 %v362_v5  ;;  %456 = vmatpush.msra.mxu2 %v1975_v20  ;;  %v1983_v22 = vld [vmem:[%s1921_s11 + $0x40] sm:$0xff]  ;;  %v2010_v33 = vld [vmem:[%s1921_s11 + $0x68] sm:$0xff] }
  0x65   : > { %438 = vmatpush.msra.mxu1 %v1948_v6  ;;  %v1998_v28 = vld [vmem:[%s1927_s9 + $0x2] ss:$0 sm:$0xff]  ;;  %v2024_v48 = vld [vmem:[%s1927_s9 + $0x3] ss:$0 sm:$0xff]  ;;  %s1202_s26 = sshll.u32 %s2199_s10, 1 }
  0x66   : > { %409 = vmatpush.msra.mxu0 %v361_v7  ;;  %1178 = vmatmul.msk.f32.vlgmr.msra.gmra.mxu1 %vm390_vm0, %v360_v8  ;;  %v2018_v46 = vld [vmem:[%s1921_s11 + $0x60] sm:$0xff]  ;;  %s988_s14 = sadd.s32 %s2200_s13, %s1202_s26 }
  0x67   : > { %1177 = vmatmul.msk.f32.vlgmr.msra.gmra.mxu0 %vm390_vm0, %v359_v9  ;;  %579 = vmatpush.msrb.mxu1 %v1934_v0  ;;  %s989_s24 = scalar_lea.hbm %s2201_s1, %s988_s14  ;;  %s1511_s23 = scalar_lea.hbm %s2201_s1, 4 }
  0x68   : > { %457 = vmatpush.msra.mxu2 %v1979_v21  ;;  %556 = vmatpush.msrb.mxu0 %v2002_v31  ;;  %s993_s21 = sshll.u32 %s989_s24, 4  ;;  %s994_s21 = int_to_ptr.hbm [resolvable:$true] %s993_s21 }
  0x69   : > { %580 = vmatpush.msrb.mxu1 %v1937_v1  ;;  %s1505_s25 = sshra.s32 %s994_s21, 4  ;;  %s1506_s25 = int_to_ptr.hbm [resolvable:$true] %s1505_s25 }
  0x6a   : > { %458 = vmatpush.msra.mxu2 %v1983_v22  ;;  %557 = vmatpush.msrb.mxu0 %v2005_v32  ;;  %s1507_s30 = scalar_lea.hbm %s1506_s25, 1  ;;  %p1512_p11 = scmp.lt.s32.totalorder %s1506_s25, %s2201_s1 }
  0x6b   : > { %581 = vmatpush.msrb.mxu1 %v1943_v4  ;;  %1179 = vmatmul.msk.f32.vlgmr.msra.gmra.mxu2 %vm390_vm0, %v360_v8  ;;  %p1508_p7 = scmp.ne.s32.totalorder %s1506_s25, %s1507_s30  ;;  %p1513_p6 = scmp.lt.s32.totalorder %s1511_s23, %s1507_s30 }
  0x6c   : > { %599 = vmatpush.msrb.mxu2 %v1972_v19  ;;  %558 = vmatpush.msrb.mxu0 %v2010_v33 }
  0x6d   : > { %582 = vmatpush.msrb.mxu1 %v1948_v6  ;;  %p1509_p3 = pnand %p1508_p7, %p1862_p0  ;;  %p1514_p12 = por %p1513_p6, %p1512_p11 }
  0x6e   : > { %600 = vmatpush.msrb.mxu2 %v1975_v20  ;;  %559 = vmatpush.msrb.mxu0 %v2018_v46 }
  0x6f   : > { %693 = vmatpush.msra.mxu1 %v2002_v31  ;;  %p1510_p5 = pneg %p1509_p3 }
  0x70   : > { %601 = vmatpush.msrb.mxu2 %v1979_v21 }
  0x71   : > { %694 = vmatpush.msra.mxu1 %v2005_v32  ;;  %p1515_p13 = pnand %p1514_p12, %p1510_p5 }
  0x72   : > { %602 = vmatpush.msrb.mxu2 %v1983_v22 }
  0x73   : > { %695 = vmatpush.msra.mxu1 %v2010_v33 }
  0x74   : > { %716 = vmatpush.msra.mxu2 %v1934_v0 }
  0x75   : > { %696 = vmatpush.msra.mxu1 %v2018_v46 }
  0x76   : > { %717 = vmatpush.msra.mxu2 %v1937_v1 }
  0x78   : > { %718 = vmatpush.msra.mxu2 %v1943_v4 }
  0x7a   : > { %719 = vmatpush.msra.mxu2 %v1948_v6 }
  0xe3   : > { %v440_v12 = vpop.f32.mrf.mxu1 }
  0xe4   : > { %v411_v13 = vpop.f32.mrf.mxu0  ;;  %v441_v14 = vadd.f32 %v1961_v10, %v440_v12 }
  0xe5   : > { %v1965_v15 = vadd.f32 %v1352_v11, %v411_v13 }
  0xe6   : > { %1180 = vmatpush.xpose.msk.msra.mxu3 %vm390_vm0, %v441_v14 }
  0xe9   : > { %1181 = vmatmul.msk.f32.vlgmr.msra.gmra.mxu3 %vm390_vm0, %v1965_v15 }
  0xee   : > { %v460_v29 = vpop.f32.mrf.mxu2 }
  0xef   : > { %v461_v30 = vadd.f32 %v1998_v28, %v460_v29 }
  0xf1   : > { %533 = vmatpush.msrb.mxu3 %v461_v30 }
 0x16c   : > { %v486_v16 = vpop.f32.mrf.mxu3 }
 0x16d   : > { %v489_v17 = vmul.f32 0.17677669, %v486_v16 }
 0x16f   : > { %v491_v18 = vsel %vm490_vm1, %v489_v17, -inf }
 0x170   : > { %492 = vmax.xlane.f32.xlu0 %v491_v18 }
 0x1e3   : > { %v493_v23 = vpop.xlane.xlu0 %492 }
 0x1e4   : > { %v494_v24 = vsub.f32 %v489_v17, %v493_v23 }
 0x1e6   : > { %v495_v25 = vmul.f32 1.442695, %v494_v24 }
 0x1e8   : > { %1355 = vpow2.f32 %v495_v25 }
 0x1ee   : > { %v1356_v26 = vpop.eup %1355 }
 0x1ef   : > { %v497_v27 = vsel %vm490_vm1, %v1356_v26, 0.0 }
 0x1f0   : > { %498 = vadd.xlane.f32.xlu0 %v497_v27 }
 0x263   : > { %v499_v34 = vpop.xlane.xlu0 %498 }
 0x264   : > { %1357 = vrcp.f32 %v499_v34  ;;  %v511_v38 = vand.u32 2147483648, %v499_v34  ;;  %v509_v40 = vand.u32 2147483647, %v499_v34  ;;  %vm505_vm3 = vweird.f32 %v499_v34 }
 0x266   : > { %v512_v42 = vor.u32 1.1754944e-38, %v511_v38  ;;  %vm510_vm5 = vcmp.eq.f32.partialorder %v509_v40, 8.507059e+37 }
 0x26a   : > { %v1358_v35 = vpop.eup %1357 }
 0x26b   : > { %v501_v36 = vmul.f32 %v1358_v35, %v499_v34  ;;  %vm506_vm2 = vweird.f32 %v1358_v35 }
 0x26c   : > { %vm507_vm4 = vmor %vm505_vm3, %vm506_vm2 }
 0x26d   : > { %v502_v37 = vsub.f32 1.0, %v501_v36 }
 0x26f   : > { %v503_v39 = vmul.f32 %v1358_v35, %v502_v37 }
 0x271   : > { %v504_v41 = vadd.f32 %v1358_v35, %v503_v39 }
 0x273   : > { %v508_v43 = vsel %vm507_vm4, %v1358_v35, %v504_v41 }
 0x274   : > { %v513_v44 = vsel %vm510_vm5, %v512_v42, %v508_v43  ;;  %vm976_vm5 = vcmask 253952  }
 0x275   : > { %v514_v45 = vmul.f32 %v1356_v26, %v513_v44 }
 0x277   : > { %1182 = vmatmul.msk.f32.vlgmr.msrb.gmra.mxu3 %vm490_vm1, %v514_v45 }
 0x2fa   : > { %v535_v47 = vpop.f32.mrf.mxu3 }
 0x2fb   : > { %1183 = vmatmul.msk.f32.vlgmr.msrb.gmra.mxu0 %vm390_vm0, %v535_v47 }
 0x378   : > { %v561_v49 = vpop.f32.mrf.mxu0 }
 0x379   : > { %v562_v50 = vadd.f32 %v2024_v48, %v561_v49 }
 0x37b   : > { %1184 = vmatmul.msk.f32.vlgmr.msrb.gmra.mxu1 %vm390_vm0, %v562_v50  ;;  %1185 = vmatmul.msk.f32.vlgmr.msrb.gmra.mxu2 %vm390_vm0, %v562_v50 }
 0x37c   : > { %830 = vmatpush.msrb.mxu2 %v2002_v31 }
 0x37e   : > { %831 = vmatpush.msrb.mxu2 %v2005_v32 }
 0x380   : > { %832 = vmatpush.msrb.mxu2 %v2010_v33 }
 0x382   : > { %833 = vmatpush.msrb.mxu2 %v2018_v46 }
 0x3f8   : > { %v584_v51 = vpop.f32.mrf.mxu1 }
 0x3f9   : > { %v585_v52 = vadd.f32 %v1961_v10, %v584_v51 }
 0x3fb   : > { %1186 = vmatpush.xpose.msk.msra.mxu3 %vm390_vm0, %v585_v52 }
 0x3fe   : > { %v604_v53 = vpop.f32.mrf.mxu2  ;;  %1187 = vmatmul.msk.f32.vlgmr.msra.gmra.mxu3 %vm390_vm0, %v1965_v15 }
 0x3ff   : > { %736 = vmatpush.msrb.mxu3 %v1972_v19  ;;  %v605_v54 = vadd.f32 %v1998_v28, %v604_v53 }
 0x401   : > { %737 = vmatpush.msrb.mxu3 %v1975_v20  ;;  %673 = vmatpush.msra.mxu0 %v605_v54 }
 0x403   : > { %738 = vmatpush.msrb.mxu3 %v1979_v21 }
 0x405   : > { %739 = vmatpush.msrb.mxu3 %v1983_v22 }
 0x407   : > { %853 = vmatpush.msra.mxu3 %v1934_v0 }
 0x409   : > { %854 = vmatpush.msra.mxu3 %v1937_v1 }
 0x40b   : > { %855 = vmatpush.msra.mxu3 %v1943_v4 }
 0x40d   : > { %856 = vmatpush.msra.mxu3 %v1948_v6 }
 0x481   : > { %v627_v55 = vpop.f32.mrf.mxu3 }
 0x482   : > { %v630_v56 = vmul.f32 0.17677669, %v627_v55 }
 0x484   : > { %v631_v57 = vsel %vm490_vm1, %v630_v56, -inf }
 0x485   : > { %632 = vmax.xlane.f32.xlu1 %v631_v57 }
 0x4f8   : > { %v633_v58 = vpop.xlane.xlu1 %632 }
 0x4f9   : > { %v634_v59 = vsub.f32 %v630_v56, %v633_v58 }
 0x4fb   : > { %v635_v60 = vmul.f32 1.442695, %v634_v59 }
 0x4fd   : > { %1359 = vpow2.f32 %v635_v60 }
 0x503   : > { %v1360_v61 = vpop.eup %1359 }
 0x504   : > { %v637_v62 = vsel %vm490_vm1, %v1360_v61, 0.0 }
 0x505   : > { %638 = vadd.xlane.f32.xlu1 %v637_v62 }
 0x578   : > { %v639_v63 = vpop.xlane.xlu1 %638 }
 0x579   : > { %1361 = vrcp.f32 %v639_v63  ;;  %v651_v3 = vand.u32 2147483648, %v639_v63  ;;  %v649_v5 = vand.u32 2147483647, %v639_v63  ;;  %vm645_vm7 = vweird.f32 %v639_v63 }
 0x57b   : > { %v652_v7 = vor.u32 1.1754944e-38, %v651_v3  ;;  %vm650_vm9 = vcmp.eq.f32.partialorder %v649_v5, 8.507059e+37 }
 0x57f   : > { %v1362_v0 = vpop.eup %1361 }
 0x580   : > { %v641_v1 = vmul.f32 %v1362_v0, %v639_v63  ;;  %vm646_vm6 = vweird.f32 %v1362_v0 }
 0x581   : > { %vm647_vm8 = vmor %vm645_vm7, %vm646_vm6 }
 0x582   : > { %v642_v2 = vsub.f32 1.0, %v641_v1 }
 0x584   : > { %v643_v4 = vmul.f32 %v1362_v0, %v642_v2  ;;  %v1176_v2 = vld [vmem:[%s1927_s9 + $0x3] sm:$0x1] }
 0x586   : > { %v644_v6 = vadd.f32 %v1362_v0, %v643_v4 }
 0x588   : > { %v648_v8 = vsel %vm647_vm8, %v1362_v0, %v644_v6 }
 0x589   : > { %v653_v9 = vsel %vm650_vm9, %v652_v7, %v648_v8 }
 0x58a   : > { %v654_v11 = vmul.f32 %v1360_v61, %v653_v9 }
 0x58c   : > { %1188 = vmatmul.msk.f32.vlgmr.msra.gmra.mxu0 %vm490_vm1, %v654_v11 }
 0x609   : > { %v675_v12 = vpop.f32.mrf.mxu0 }
 0x60a   : > { %1189 = vmatmul.msk.f32.vlgmr.msra.gmra.mxu1 %vm390_vm0, %v675_v12 }
 0x687   : > { %v698_v13 = vpop.f32.mrf.mxu1 }
 0x688   : > { %v699_v14 = vadd.f32 %v2024_v48, %v698_v13 }
 0x68a   : > { %1190 = vmatmul.msk.f32.vlgmr.msra.gmra.mxu2 %vm390_vm0, %v699_v14  ;;  %1191 = vmatmul.msk.f32.vlgmr.msrb.gmra.mxu3 %vm390_vm0, %v699_v14 }
 0x68b   : > { %968 = vmatpush.msrb.mxu3 %v2002_v31 }
 0x68d   : > { %969 = vmatpush.msrb.mxu3 %v2005_v32 }
 0x68f   : > { %970 = vmatpush.msrb.mxu3 %v2010_v33 }
 0x691   : > { %971 = vmatpush.msrb.mxu3 %v2018_v46 }
 0x70d   : > { %v721_v16 = vpop.f32.mrf.mxu2  ;;  %v741_v17 = vpop.f32.mrf.mxu3 }
 0x70e   : > { %v722_v18 = vadd.f32 %v1961_v10, %v721_v16  ;;  %v742_v23 = vadd.f32 %v1998_v28, %v741_v17 }
 0x710   : > { %1192 = vmatpush.xpose.msk.msrb.mxu0 %vm390_vm0, %v722_v18  ;;  %810 = vmatpush.msrb.mxu1 %v742_v23 }
 0x713   : > { %1193 = vmatmul.msk.f32.vlgmr.msrb.gmra.mxu0 %vm390_vm0, %v1965_v15 }
 0x714   : > { %873 = vmatpush.msra.mxu0 %v1972_v19 }
 0x716   : > { %874 = vmatpush.msra.mxu0 %v1975_v20 }
 0x718   : > { %875 = vmatpush.msra.mxu0 %v1979_v21 }
 0x71a   : > { %876 = vmatpush.msra.mxu0 %v1983_v22 }
 0x790   : > { %v764_v24 = vpop.f32.mrf.mxu0 }
 0x791   : > { %v767_v25 = vmul.f32 0.17677669, %v764_v24 }
 0x793   : > { %v768_v26 = vsel %vm490_vm1, %v767_v25, -inf }
 0x794   : > { %769 = vmax.xlane.f32.xlu2 %v768_v26 }
 0x807   : > { %v770_v27 = vpop.xlane.xlu2 %769 }
 0x808   : > { %v771_v29 = vsub.f32 %v767_v25, %v770_v27 }
 0x80a   : > { %v772_v30 = vmul.f32 1.442695, %v771_v29 }
 0x80c   : > { %1363 = vpow2.f32 %v772_v30 }
 0x812   : > { %v1364_v31 = vpop.eup %1363 }
 0x813   : > { %v774_v19 = vsel %vm490_vm1, %v1364_v31, 0.0 }
 0x814   : > { %775 = vadd.xlane.f32.xlu2 %v774_v19 }
 0x887   : > { %v776_v32 = vpop.xlane.xlu2 %775 }
 0x888   : > { %1365 = vrcp.f32 %v776_v32  ;;  %v788_v34 = vand.u32 2147483648, %v776_v32  ;;  %v786_v35 = vand.u32 2147483647, %v776_v32  ;;  %vm782_vm11 = vweird.f32 %v776_v32 }
 0x88a   : > { %v789_v37 = vor.u32 1.1754944e-38, %v788_v34  ;;  %vm787_vm13 = vcmp.eq.f32.partialorder %v786_v35, 8.507059e+37 }
 0x88e   : > { %v1366_v20 = vpop.eup %1365 }
 0x88f   : > { %v778_v33 = vmul.f32 %v1366_v20, %v776_v32  ;;  %vm783_vm10 = vweird.f32 %v1366_v20 }
 0x890   : > { %vm784_vm12 = vmor %vm782_vm11, %vm783_vm10 }
 0x891   : > { %v779_v21 = vsub.f32 1.0, %v778_v33 }
 0x893   : > { %v780_v22 = vmul.f32 %v1366_v20, %v779_v21 }
 0x895   : > { %v781_v36 = vadd.f32 %v1366_v20, %v780_v22 }
 0x897   : > { %v785_v38 = vsel %vm784_vm12, %v1366_v20, %v781_v36 }
 0x898   : > { %v790_v39 = vsel %vm787_vm13, %v789_v37, %v785_v38 }
 0x899   : > { %v791_v40 = vmul.f32 %v1364_v31, %v790_v39 }
 0x89b   : > { %1194 = vmatmul.msk.f32.vlgmr.msrb.gmra.mxu1 %vm490_vm1, %v791_v40 }
 0x918   : > { %v812_v41 = vpop.f32.mrf.mxu1 }
 0x919   : > { %1195 = vmatmul.msk.f32.vlgmr.msrb.gmra.mxu2 %vm390_vm0, %v812_v41 }
 0x99c   : > { %v835_v42 = vpop.f32.mrf.mxu2 }
 0x99d   : > { %v836_v43 = vadd.f32 %v2024_v48, %v835_v42 }
 0x99f   : > { %1196 = vmatmul.msk.f32.vlgmr.msra.gmra.mxu3 %vm390_vm0, %v836_v43  ;;  %1197 = vmatmul.msk.f32.vlgmr.msra.gmra.mxu0 %vm390_vm0, %v836_v43 }
 0xa1c   : > { %v878_v44 = vpop.f32.mrf.mxu0 }
 0xa1d   : > { %v879_v45 = vadd.f32 %v1998_v28, %v878_v44 }
 0xa1f   : > { %948 = vmatpush.msra.mxu2 %v879_v45 }
 0xa22   : > { %v858_v46 = vpop.f32.mrf.mxu3 }
 0xa23   : > { %v859_v47 = vadd.f32 %v1961_v10, %v858_v46 }
 0xa25   : > { %1198 = vmatpush.xpose.msk.msra.mxu1 %vm390_vm0, %v859_v47 }
 0xa28   : > { %1199 = vmatmul.msk.f32.vlgmr.msra.gmra.mxu1 %vm390_vm0, %v1965_v15 }
 0xaa5   : > { %v901_v49 = vpop.f32.mrf.mxu1 }
 0xaa6   : > { %v904_v50 = vmul.f32 0.17677669, %v901_v49 }
 0xaa8   : > { %v906_v48 = vsel %vm905_vm14, %v904_v50, -inf }
 0xaa9   : > { %907 = vmax.xlane.f32.xlu0 %v906_v48 }
 0xb1c   : > { %v908_v51 = vpop.xlane.xlu0 %907 }
 0xb1d   : > { %v909_v52 = vsub.f32 %v904_v50, %v908_v51 }
 0xb1f   : > { %v910_v53 = vmul.f32 1.442695, %v909_v52 }
 0xb21   : > { %1367 = vpow2.f32 %v910_v53 }
 0xb27   : > { %v1368_v54 = vpop.eup %1367 }
 0xb28   : > { %v912_v28 = vsel %vm905_vm14, %v1368_v54, 0.0 }
 0xb29   : > { %913 = vadd.xlane.f32.xlu1 %v912_v28 }
 0xb9c   : > { %v914_v55 = vpop.xlane.xlu1 %913 }
 0xb9d   : > { %1369 = vrcp.f32 %v914_v55  ;;  %v926_v58 = vand.u32 2147483648, %v914_v55  ;;  %v924_v59 = vand.u32 2147483647, %v914_v55  ;;  %vm920_vm2 = vweird.f32 %v914_v55 }
 0xb9f   : > { %v927_v61 = vor.u32 1.1754944e-38, %v926_v58  ;;  %vm925_vm4 = vcmp.eq.f32.partialorder %v924_v59, 8.507059e+37 }
 0xba3   : > { %v1370_v10 = vpop.eup %1369 }
 0xba4   : > { %v916_v56 = vmul.f32 %v1370_v10, %v914_v55  ;;  %vm921_vm15 = vweird.f32 %v1370_v10 }
 0xba5   : > { %vm922_vm3 = vmor %vm920_vm2, %vm921_vm15 }
 0xba6   : > { %v917_v57 = vsub.f32 1.0, %v916_v56 }
 0xba8   : > { %v918_v15 = vmul.f32 %v1370_v10, %v917_v57 }
 0xbaa   : > { %v919_v60 = vadd.f32 %v1370_v10, %v918_v15 }
 0xbac   : > { %v923_v62 = vsel %vm922_vm3, %v1370_v10, %v919_v60 }
 0xbad   : > { %v928_v63 = vsel %vm925_vm4, %v927_v61, %v923_v62 }
 0xbae   : > { %v929_v0 = vmul.f32 %v1368_v54, %v928_v63 }
 0xbb0   : > { %1200 = vmatmul.msk.f32.vlgmr.msra.gmra.mxu2 %vm490_vm1, %v929_v0 }
 0xc33   : > { %v950_v1 = vpop.f32.mrf.mxu2 }
 0xc34   : > { %1201 = vmatmul.msk.f32.vlgmr.msrb.gmra.mxu3 %vm390_vm0, %v950_v1 }
 0xcb7   : > { %v973_v3 = vpop.f32.mrf.mxu3 }
 0xcb8   : > { %v974_v4 = vadd.f32 %v1176_v2, %v973_v3 }
 0xcba   : > { %977 = vst.msk [vmem:[%s357_s17] sm:$0x1] %vm976_vm5, %v974_v4 }
 0xcbb   : > { %1518 = shalt.err (!%p1515_p13)
}
 0xcbc   : > { %1214 = dma.vmem_to_hbm [thread:$0]  (%p1862_p0), %s992_s12, 16, %s994_s21, %s979_s4  }
 0xcbd PF: > { %s2202_s0 = sld [smem:[#allocation18_spill]]  ;;  %p1234_p4 = scmp.ge.s32.totalorder %s1649_s28, 2 }
 0xcbf   : > { %p1230_p9 = pnand %p1234_p4, %p1866_p1 }
 0xcc1   : > { %p1231_p10 = pneg %p1230_p9 }
 0xcc3   : > { %s1005_s20 = sand.u32 1, %s2202_s0  }
 0xcc4   : > { %s1006_s9 = scalar_lea.sflag [#allocation4], %s1005_s20 }
 0xcc5   : > { %1592 = dma.done.wait (%p1231_p10), %s1006_s9, 16  }
 0xcc6   : > { %1594 = vsyncadd (%p1231_p10), %s1006_s9, 4294967280  ;;  %s26_s28 = sadd.s32 1, %s1649_s28   ;;  %s2205_s18 = sld [smem:[#allocation16_spill]] }
 0xcc7   : > { %p2103_p2 = scmp.ge.s32.totalorder %s26_s28, 6   ;;  %s2206_s17 = sld [smem:[#allocation26_spill]] }
 0xcc8   : > { %s2207_s13 = sld [smem:[#allocation17_spill]]  ;;  %s2214_s15 = smov %s1601_s16 }
 0xcc9   : > { %s2208_s20 = sld [smem:[#allocation25_spill]]  ;;  %s2218_s21 = smov %s1625_s22 }
 0xcca   : > { %s2209_s26 = sld [smem:[#allocation19_spill]]  ;;  %s2220_s25 = smov %s1645_s27 }
 0xccb   : > { %s2210_s23 = sld [smem:[#allocation28_spill]] }
 0xccc   : > { %s2211_s24 = sld [smem:[#allocation22_spill]]  ;;  %s2215_s16 = smov %s2205_s18 }
 0xccd   : > { %s2212_s14 = sld [smem:[#allocation23_spill]]  ;;  %s2216_s18 = smov %s1613_s19 }
 0xcce   : > { %s2213_s7 = sld [smem:[#allocation24_spill]]  ;;  %s2217_s19 = smov %s2207_s13 }
 0xcd0   : > { %s2219_s22 = smov %s2209_s26  ;;  %25 = sbr.rel (!%p2103_p2) target bundleno = 18 (0x12), region = 124 }
 0xcd3   : > { %s2221_s26 = smov %s2212_s14 }
 0xcd4   : > { %s2222_s27 = smov %s2213_s7 }
 0xcd5   :  { %1011 = vsyncpa [#allocation3], 1 }
 0xcd6   :  { %1013 = vsyncpa [#allocation3 + $0x1], 1 }
 0xcd7   :  { %1014 = vsyncpa [#allocation6], 1 }
 0xcd8   :  { %1016 = vsyncpa [#allocation6 + $0x1], 1 }
 0xcd9   :  { %1017 = vsyncpa [#allocation9], 1 }
 0xcda   :  { %1019 = vsyncpa [#allocation9 + $0x1], 1 }
 0xcdb   :  { %1020 = vsyncpa [#allocation4], 1 }
 0xcdc   :  { %1022 = vsyncpa [#allocation4 + $0x1], 1 }

</bundles_post_ra>
